<compile_context>
chip_gen: v5e
topology: v5e:2x2
jax: 0.10.0
libtpu: 0.0.40
codegen_flags: <defaults>
</compile_context>

<pallas_src>
import functools

import jax
import jax.numpy as jnp
from jax.experimental import pallas as pl
from jax.experimental.pallas import tpu as pltpu


def _pad8(n):
    return (n + 7) // 8 * 8


def _ebm_kernel(B, S, V, H, xs_ref, slab_ref, o_ref):
    """Whole-array kernel; both inputs are small full tensors in VMEM.

    xs_ref  : (S*B, V)  one-hot/float input, seq-major rows (row = t*B + b)
    slab_ref: (R, H)    packed parameters, 8-row-aligned segments:
                          [WE | POS(+emb bias) | CW1..CW3 (prev,cur,next) |
                           W1 | bias block (cb1,cb2,cb3,b1,w2_row,b2,pad)]
    o_ref   : (B, 1)    energies
    """
    SB = S * B
    f32 = jnp.float32

    # Static segment offsets (all multiples of 8 rows -> aligned loads).
    WE = 0
    POS = WE + _pad8(V)
    CW = POS + SB
    W1 = CW + 9 * H
    BIAS = W1 + S * H

    we = slab_ref[pl.ds(WE, V), :]            # (V, H)
    pos = slab_ref[pl.ds(POS, SB), :]         # (S*B, H), emb bias folded in
    bias = slab_ref[pl.ds(BIAS, 8), :]        # (8, H)

    # --- embedding + positional encoding (+ folded embedding bias) ----------
    h = jnp.dot(xs_ref[...], we, preferred_element_type=f32) + pos

    row = jax.lax.broadcasted_iota(jnp.int32, (SB, H), 0)
    is_first = row < B            # rows with t == 0
    is_last = row >= SB - B       # rows with t == S - 1

    # --- 3 x (Conv1d(kernel=3, pad=1) + ReLU): three accumulated dots -------
    # out[t] = h[t-1] @ Wp + h[t] @ Wc + h[t+1] @ Wn
    for k in range(3):
        base = CW + k * 3 * H
        w_prev = slab_ref[pl.ds(base, H), :]
        w_cur = slab_ref[pl.ds(base + H, H), :]
        w_next = slab_ref[pl.ds(base + 2 * H, H), :]
        h_prev = jnp.where(is_first, 0.0, pltpu.roll(h, shift=B, axis=0))
        h_next = jnp.where(is_last, 0.0, pltpu.roll(h, shift=SB - B, axis=0))
        acc = (jnp.dot(h, w_cur, preferred_element_type=f32)
               + jnp.dot(h_prev, w_prev, preferred_element_type=f32)
               + jnp.dot(h_next, w_next, preferred_element_type=f32))
        h = jnp.maximum(acc + bias[k:k + 1, :], 0.0)

    # --- MLP layer 1: accumulate over positions, S depth-H dots -------------
    # m1[b] = sum_t h[t*B + b, :] @ W1[t*H:(t+1)*H, :]
    acc = jnp.zeros((B, H), f32)
    for t in range(S):
        acc = acc + jnp.dot(h[t * B:(t + 1) * B, :],
                            slab_ref[pl.ds(W1 + t * H, H), :],
                            preferred_element_type=f32)
    m1 = jnp.maximum(acc + bias[3:4, :], 0.0)          # (B, H)

    # --- MLP layer 2 -> scalar energy: VPU multiply + lane reduction --------
    w2_row = bias[4:5, :]                              # (1, H)
    b2 = bias[5:6, 0:1]                                # (1, 1)
    o_ref[...] = jnp.sum(m1 * w2_row, axis=-1, keepdims=True) + b2


def pack_params(params, batch_size):
    """One-time packing of all parameters into a single (R, H) slab.

    Called ONCE outside the jitted per-call path (review: hoist param prep).
    """
    V, H = params["we"].shape
    S = params["pos"].shape[0]
    B = batch_size
    f32 = jnp.float32

    def pad8_rows(a):
        r = (-a.shape[0]) % 8
        return a if r == 0 else jnp.pad(a, ((0, r), (0, 0)))

    we_pad = pad8_rows(params["we"])                                  # (24, H)
    pos_be = jnp.repeat(params["pos"] + params["be"], B, axis=0)      # (S*B, H)
    cw = jnp.concatenate(
        [params[f"cw{i}"].reshape(3 * H, H) for i in (1, 2, 3)], axis=0)  # (9H, H)
    w1 = params["w1"]                                                 # (S*H, H)

    bias = jnp.zeros((8, H), f32)
    bias = bias.at[0].set(params["cb1"][0])
    bias = bias.at[1].set(params["cb2"][0])
    bias = bias.at[2].set(params["cb3"][0])
    bias = bias.at[3].set(params["b1"][0])
    bias = bias.at[4].set(params["w2"][:, 0])
    bias = bias.at[5, 0].set(params["b2"][0, 0])

    slab = jnp.concatenate([we_pad, pos_be, cw, w1, bias], axis=0)    # (R, H)
    return slab


def ebm_forward(x, slab):
    """Per-call path: only the x re-layout + one pallas_call."""
    B, S, V = x.shape
    H = slab.shape[1]
    xs = jnp.transpose(x, (1, 0, 2)).reshape(S * B, V)   # seq-major rows

    out = pl.pallas_call(
        functools.partial(_ebm_kernel, B, S, V, H),
        out_shape=jax.ShapeDtypeStruct((B, 1), jnp.float32),
        in_specs=[pl.BlockSpec(memory_space=pltpu.MemorySpace.VMEM),
                  pl.BlockSpec(memory_space=pltpu.MemorySpace.VMEM)],
        out_specs=pl.BlockSpec(memory_space=pltpu.MemorySpace.VMEM),
    )(xs, slab)
    return out                                            # (B, 1)


def ebm_reference(x, p):
    """Pure-JAX reference matching the PyTorch forward semantics."""
    h = x @ p["we"] + p["be"] + p["pos"]                  # (B, S, H)
    for i in (1, 2, 3):
        cw, cb = p[f"cw{i}"], p[f"cb{i}"]
        hp = jnp.pad(h, ((0, 0), (1, 1), (0, 0)))
        acc = hp[:, :-2] @ cw[0] + hp[:, 1:-1] @ cw[1] + hp[:, 2:] @ cw[2]
        h = jnp.maximum(acc + cb, 0.0)
    B, S, H = h.shape
    m1 = jnp.maximum(h.reshape(B, S * H) @ p["w1"] + p["b1"], 0.0)
    return m1 @ p["w2"] + p["b2"]


def make_params(key, vocab_size, hidden_dim, seq_len):
    ks = jax.random.split(key, 12)
    s = 0.1
    f32 = jnp.float32

    def nrm(k, shape):
        return (jax.random.normal(k, shape, f32) * s).astype(f32)

    H, V, S = hidden_dim, vocab_size, seq_len
    return {
        # nn.Linear(vocab, hidden): weight stored transposed (V, H)
        "we": nrm(ks[0], (V, H)),
        "be": nrm(ks[1], (1, H)),
        # positional encoding (1, S, H) -> stored (S, H)
        "pos": nrm(ks[2], (S, H)),
        # Conv1d weights: PyTorch (C_out, C_in, K) -> stored as (K, C_in, C_out)
        "cw1": nrm(ks[3], (3, H, H)), "cb1": nrm(ks[4], (1, H)),
        "cw2": nrm(ks[5], (3, H, H)), "cb2": nrm(ks[6], (1, H)),
        "cw3": nrm(ks[7], (3, H, H)), "cb3": nrm(ks[8], (1, H)),
        # mlp[0]: Linear(S*H, H): weight stored transposed (S*H, H),
        # row index = t*H + c, matching reshape(B, -1) of (B, S, H).
        "w1": nrm(ks[9], (S * H, H)),
        "b1": nrm(ks[10], (1, H)),
        # mlp[2]: Linear(H, 1): weight stored transposed (H, 1)
        "w2": nrm(ks[11], (H, 1)),
        "b2": jnp.zeros((1, 1), f32),
    }


if __name__ == "__main__":
    B, S, V, H = 2, 8, 21, 32   # small shapes consistent with (batch, seq, vocab)

    key = jax.random.PRNGKey(0)
    kx, kp = jax.random.split(key)
    x = jax.random.normal(kx, (B, S, V), jnp.float32)
    params = make_params(kp, vocab_size=V, hidden_dim=H, seq_len=S)

    # Parameter packing hoisted out of the per-call jitted path.
    slab = jax.block_until_ready(pack_params(params, batch_size=B))

    out = jax.jit(ebm_forward)(x, slab)
    out = jax.block_until_ready(out)

    ref = ebm_reference(x, params)
    assert out.shape == (B, 1), out.shape
    # Tolerance kept at 1e-2: default TPU matmul precision may use bf16 MXU
    # passes on either path; layout/indexing bugs produce O(0.1-1) errors and
    # are still caught.
    assert jnp.allclose(out, ref, atol=1e-2, rtol=1e-2), (out, ref)

    print("KERNEL_OK")
</pallas_src>

<mosaic_0001>
module attributes {stable_mosaic.version = 11 : i64} {
  func.func @_ebm_kernel(%arg0: memref<16x21xf32, #tpu.memory_space<vmem>>, %arg1: memref<592x32xf32, #tpu.memory_space<vmem>>, %arg2: memref<2x1xf32, #tpu.memory_space<vmem>>) attributes {dimension_semantics = [], scalar_prefetch = 0 : i64, scratch_operands = 0 : i64, tpu.core_type = #tpu.core_type<tc>} {
    %c0 = arith.constant 0 : index
    %c0_0 = arith.constant 0 : index
    %0 = vector.load %arg1[%c0, %c0_0] : memref<592x32xf32, #tpu.memory_space<vmem>>, vector<21x32xf32>
    %c24 = arith.constant 24 : index
    %c0_1 = arith.constant 0 : index
    %1 = vector.load %arg1[%c24, %c0_1] : memref<592x32xf32, #tpu.memory_space<vmem>>, vector<16x32xf32>
    %c584 = arith.constant 584 : index
    %c0_2 = arith.constant 0 : index
    %2 = vector.load %arg1[%c584, %c0_2] : memref<592x32xf32, #tpu.memory_space<vmem>>, vector<8x32xf32>
    %c0_3 = arith.constant 0 : index
    %c0_4 = arith.constant 0 : index
    %3 = vector.load %arg0[%c0_3, %c0_4] : memref<16x21xf32, #tpu.memory_space<vmem>>, vector<16x21xf32>
    %cst = arith.constant dense<0.000000e+00> : vector<16x32xf32>
    %4 = tpu.matmul %3, %0, %cst {dimension_numbers = #tpu.dot_dimension_numbers<[1], [0], [0], [1], [0, 0, 1, 1], [], []>} : vector<16x21xf32>, vector<21x32xf32>, vector<16x32xf32> -> vector<16x32xf32>
    %5 = arith.addf %4, %1 : vector<16x32xf32>
    %6 = tpu.iota {dimensions = array<i32: 0>} : vector<16x32xi32>
    %c2_i32 = arith.constant 2 : i32
    %7 = vector.broadcast %c2_i32 : i32 to vector<16x32xi32>
    %8 = arith.cmpi slt, %6, %7 : vector<16x32xi32>
    %c14_i32 = arith.constant 14 : i32
    %9 = vector.broadcast %c14_i32 : i32 to vector<16x32xi32>
    %10 = arith.cmpi sge, %6, %9 : vector<16x32xi32>
    %c40 = arith.constant 40 : index
    %c0_5 = arith.constant 0 : index
    %11 = vector.load %arg1[%c40, %c0_5] : memref<592x32xf32, #tpu.memory_space<vmem>>, vector<32x32xf32>
    %c72 = arith.constant 72 : index
    %c0_6 = arith.constant 0 : index
    %12 = vector.load %arg1[%c72, %c0_6] : memref<592x32xf32, #tpu.memory_space<vmem>>, vector<32x32xf32>
    %c104 = arith.constant 104 : index
    %c0_7 = arith.constant 0 : index
    %13 = vector.load %arg1[%c104, %c0_7] : memref<592x32xf32, #tpu.memory_space<vmem>>, vector<32x32xf32>
    %c2_i32_8 = arith.constant 2 : i32
    %14 = tpu.dynamic_rotate %5 by %c2_i32_8 dim 0 : vector<16x32xf32>, i32 -> vector<16x32xf32>
    %cst_9 = arith.constant 0.000000e+00 : f32
    %15 = vector.broadcast %cst_9 : f32 to vector<16x32xf32>
    %16 = arith.select %8, %15, %14 : vector<16x32xi1>, vector<16x32xf32>
    %c14_i32_10 = arith.constant 14 : i32
    %17 = tpu.dynamic_rotate %5 by %c14_i32_10 dim 0 : vector<16x32xf32>, i32 -> vector<16x32xf32>
    %cst_11 = arith.constant 0.000000e+00 : f32
    %18 = vector.broadcast %cst_11 : f32 to vector<16x32xf32>
    %19 = arith.select %10, %18, %17 : vector<16x32xi1>, vector<16x32xf32>
    %cst_12 = arith.constant dense<0.000000e+00> : vector<16x32xf32>
    %20 = tpu.matmul %5, %12, %cst_12 {dimension_numbers = #tpu.dot_dimension_numbers<[1], [0], [0], [1], [0, 0, 1, 1], [], []>} : vector<16x32xf32>, vector<32x32xf32>, vector<16x32xf32> -> vector<16x32xf32>
    %cst_13 = arith.constant dense<0.000000e+00> : vector<16x32xf32>
    %21 = tpu.matmul %16, %11, %cst_13 {dimension_numbers = #tpu.dot_dimension_numbers<[1], [0], [0], [1], [0, 0, 1, 1], [], []>} : vector<16x32xf32>, vector<32x32xf32>, vector<16x32xf32> -> vector<16x32xf32>
    %22 = arith.addf %20, %21 : vector<16x32xf32>
    %cst_14 = arith.constant dense<0.000000e+00> : vector<16x32xf32>
    %23 = tpu.matmul %19, %13, %cst_14 {dimension_numbers = #tpu.dot_dimension_numbers<[1], [0], [0], [1], [0, 0, 1, 1], [], []>} : vector<16x32xf32>, vector<32x32xf32>, vector<16x32xf32> -> vector<16x32xf32>
    %24 = arith.addf %22, %23 : vector<16x32xf32>
    %25 = vector.extract_strided_slice %2 {offsets = [0, 0], sizes = [1, 32], strides = [1, 1]} : vector<8x32xf32> to vector<1x32xf32>
    %26 = vector.broadcast %25 : vector<1x32xf32> to vector<16x32xf32>
    %27 = arith.addf %24, %26 : vector<16x32xf32>
    %cst_15 = arith.constant 0.000000e+00 : f32
    %28 = vector.broadcast %cst_15 : f32 to vector<16x32xf32>
    %29 = arith.maximumf %27, %28 : vector<16x32xf32>
    %c136 = arith.constant 136 : index
    %c0_16 = arith.constant 0 : index
    %30 = vector.load %arg1[%c136, %c0_16] : memref<592x32xf32, #tpu.memory_space<vmem>>, vector<32x32xf32>
    %c168 = arith.constant 168 : index
    %c0_17 = arith.constant 0 : index
    %31 = vector.load %arg1[%c168, %c0_17] : memref<592x32xf32, #tpu.memory_space<vmem>>, vector<32x32xf32>
    %c200 = arith.constant 200 : index
    %c0_18 = arith.constant 0 : index
    %32 = vector.load %arg1[%c200, %c0_18] : memref<592x32xf32, #tpu.memory_space<vmem>>, vector<32x32xf32>
    %c2_i32_19 = arith.constant 2 : i32
    %33 = tpu.dynamic_rotate %29 by %c2_i32_19 dim 0 : vector<16x32xf32>, i32 -> vector<16x32xf32>
    %cst_20 = arith.constant 0.000000e+00 : f32
    %34 = vector.broadcast %cst_20 : f32 to vector<16x32xf32>
    %35 = arith.select %8, %34, %33 : vector<16x32xi1>, vector<16x32xf32>
    %c14_i32_21 = arith.constant 14 : i32
    %36 = tpu.dynamic_rotate %29 by %c14_i32_21 dim 0 : vector<16x32xf32>, i32 -> vector<16x32xf32>
    %cst_22 = arith.constant 0.000000e+00 : f32
    %37 = vector.broadcast %cst_22 : f32 to vector<16x32xf32>
    %38 = arith.select %10, %37, %36 : vector<16x32xi1>, vector<16x32xf32>
    %cst_23 = arith.constant dense<0.000000e+00> : vector<16x32xf32>
    %39 = tpu.matmul %29, %31, %cst_23 {dimension_numbers = #tpu.dot_dimension_numbers<[1], [0], [0], [1], [0, 0, 1, 1], [], []>} : vector<16x32xf32>, vector<32x32xf32>, vector<16x32xf32> -> vector<16x32xf32>
    %cst_24 = arith.constant dense<0.000000e+00> : vector<16x32xf32>
    %40 = tpu.matmul %35, %30, %cst_24 {dimension_numbers = #tpu.dot_dimension_numbers<[1], [0], [0], [1], [0, 0, 1, 1], [], []>} : vector<16x32xf32>, vector<32x32xf32>, vector<16x32xf32> -> vector<16x32xf32>
    %41 = arith.addf %39, %40 : vector<16x32xf32>
    %cst_25 = arith.constant dense<0.000000e+00> : vector<16x32xf32>
    %42 = tpu.matmul %38, %32, %cst_25 {dimension_numbers = #tpu.dot_dimension_numbers<[1], [0], [0], [1], [0, 0, 1, 1], [], []>} : vector<16x32xf32>, vector<32x32xf32>, vector<16x32xf32> -> vector<16x32xf32>
    %43 = arith.addf %41, %42 : vector<16x32xf32>
    %44 = vector.extract_strided_slice %2 {offsets = [1, 0], sizes = [1, 32], strides = [1, 1]} : vector<8x32xf32> to vector<1x32xf32>
    %45 = vector.broadcast %44 : vector<1x32xf32> to vector<16x32xf32>
    %46 = arith.addf %43, %45 : vector<16x32xf32>
    %cst_26 = arith.constant 0.000000e+00 : f32
    %47 = vector.broadcast %cst_26 : f32 to vector<16x32xf32>
    %48 = arith.maximumf %46, %47 : vector<16x32xf32>
    %c232 = arith.constant 232 : index
    %c0_27 = arith.constant 0 : index
    %49 = vector.load %arg1[%c232, %c0_27] : memref<592x32xf32, #tpu.memory_space<vmem>>, vector<32x32xf32>
    %c264 = arith.constant 264 : index
    %c0_28 = arith.constant 0 : index
    %50 = vector.load %arg1[%c264, %c0_28] : memref<592x32xf32, #tpu.memory_space<vmem>>, vector<32x32xf32>
    %c296 = arith.constant 296 : index
    %c0_29 = arith.constant 0 : index
    %51 = vector.load %arg1[%c296, %c0_29] : memref<592x32xf32, #tpu.memory_space<vmem>>, vector<32x32xf32>
    %c2_i32_30 = arith.constant 2 : i32
    %52 = tpu.dynamic_rotate %48 by %c2_i32_30 dim 0 : vector<16x32xf32>, i32 -> vector<16x32xf32>
    %cst_31 = arith.constant 0.000000e+00 : f32
    %53 = vector.broadcast %cst_31 : f32 to vector<16x32xf32>
    %54 = arith.select %8, %53, %52 : vector<16x32xi1>, vector<16x32xf32>
    %c14_i32_32 = arith.constant 14 : i32
    %55 = tpu.dynamic_rotate %48 by %c14_i32_32 dim 0 : vector<16x32xf32>, i32 -> vector<16x32xf32>
    %cst_33 = arith.constant 0.000000e+00 : f32
    %56 = vector.broadcast %cst_33 : f32 to vector<16x32xf32>
    %57 = arith.select %10, %56, %55 : vector<16x32xi1>, vector<16x32xf32>
    %cst_34 = arith.constant dense<0.000000e+00> : vector<16x32xf32>
    %58 = tpu.matmul %48, %50, %cst_34 {dimension_numbers = #tpu.dot_dimension_numbers<[1], [0], [0], [1], [0, 0, 1, 1], [], []>} : vector<16x32xf32>, vector<32x32xf32>, vector<16x32xf32> -> vector<16x32xf32>
    %cst_35 = arith.constant dense<0.000000e+00> : vector<16x32xf32>
    %59 = tpu.matmul %54, %49, %cst_35 {dimension_numbers = #tpu.dot_dimension_numbers<[1], [0], [0], [1], [0, 0, 1, 1], [], []>} : vector<16x32xf32>, vector<32x32xf32>, vector<16x32xf32> -> vector<16x32xf32>
    %60 = arith.addf %58, %59 : vector<16x32xf32>
    %cst_36 = arith.constant dense<0.000000e+00> : vector<16x32xf32>
    %61 = tpu.matmul %57, %51, %cst_36 {dimension_numbers = #tpu.dot_dimension_numbers<[1], [0], [0], [1], [0, 0, 1, 1], [], []>} : vector<16x32xf32>, vector<32x32xf32>, vector<16x32xf32> -> vector<16x32xf32>
    %62 = arith.addf %60, %61 : vector<16x32xf32>
    %63 = vector.extract_strided_slice %2 {offsets = [2, 0], sizes = [1, 32], strides = [1, 1]} : vector<8x32xf32> to vector<1x32xf32>
    %64 = vector.broadcast %63 : vector<1x32xf32> to vector<16x32xf32>
    %65 = arith.addf %62, %64 : vector<16x32xf32>
    %cst_37 = arith.constant 0.000000e+00 : f32
    %66 = vector.broadcast %cst_37 : f32 to vector<16x32xf32>
    %67 = arith.maximumf %65, %66 : vector<16x32xf32>
    %cst_38 = arith.constant 0.000000e+00 : f32
    %68 = vector.broadcast %cst_38 : f32 to vector<2x32xf32>
    %69 = vector.extract_strided_slice %67 {offsets = [0, 0], sizes = [2, 32], strides = [1, 1]} : vector<16x32xf32> to vector<2x32xf32>
    %c328 = arith.constant 328 : index
    %c0_39 = arith.constant 0 : index
    %70 = vector.load %arg1[%c328, %c0_39] : memref<592x32xf32, #tpu.memory_space<vmem>>, vector<32x32xf32>
    %cst_40 = arith.constant dense<0.000000e+00> : vector<2x32xf32>
    %71 = tpu.matmul %69, %70, %cst_40 {dimension_numbers = #tpu.dot_dimension_numbers<[1], [0], [0], [1], [0, 0, 1, 1], [], []>} : vector<2x32xf32>, vector<32x32xf32>, vector<2x32xf32> -> vector<2x32xf32>
    %72 = arith.addf %68, %71 : vector<2x32xf32>
    %73 = vector.extract_strided_slice %67 {offsets = [2, 0], sizes = [2, 32], strides = [1, 1]} : vector<16x32xf32> to vector<2x32xf32>
    %c360 = arith.constant 360 : index
    %c0_41 = arith.constant 0 : index
    %74 = vector.load %arg1[%c360, %c0_41] : memref<592x32xf32, #tpu.memory_space<vmem>>, vector<32x32xf32>
    %cst_42 = arith.constant dense<0.000000e+00> : vector<2x32xf32>
    %75 = tpu.matmul %73, %74, %cst_42 {dimension_numbers = #tpu.dot_dimension_numbers<[1], [0], [0], [1], [0, 0, 1, 1], [], []>} : vector<2x32xf32>, vector<32x32xf32>, vector<2x32xf32> -> vector<2x32xf32>
    %76 = arith.addf %72, %75 : vector<2x32xf32>
    %77 = vector.extract_strided_slice %67 {offsets = [4, 0], sizes = [2, 32], strides = [1, 1]} : vector<16x32xf32> to vector<2x32xf32>
    %c392 = arith.constant 392 : index
    %c0_43 = arith.constant 0 : index
    %78 = vector.load %arg1[%c392, %c0_43] : memref<592x32xf32, #tpu.memory_space<vmem>>, vector<32x32xf32>
    %cst_44 = arith.constant dense<0.000000e+00> : vector<2x32xf32>
    %79 = tpu.matmul %77, %78, %cst_44 {dimension_numbers = #tpu.dot_dimension_numbers<[1], [0], [0], [1], [0, 0, 1, 1], [], []>} : vector<2x32xf32>, vector<32x32xf32>, vector<2x32xf32> -> vector<2x32xf32>
    %80 = arith.addf %76, %79 : vector<2x32xf32>
    %81 = vector.extract_strided_slice %67 {offsets = [6, 0], sizes = [2, 32], strides = [1, 1]} : vector<16x32xf32> to vector<2x32xf32>
    %c424 = arith.constant 424 : index
    %c0_45 = arith.constant 0 : index
    %82 = vector.load %arg1[%c424, %c0_45] : memref<592x32xf32, #tpu.memory_space<vmem>>, vector<32x32xf32>
    %cst_46 = arith.constant dense<0.000000e+00> : vector<2x32xf32>
    %83 = tpu.matmul %81, %82, %cst_46 {dimension_numbers = #tpu.dot_dimension_numbers<[1], [0], [0], [1], [0, 0, 1, 1], [], []>} : vector<2x32xf32>, vector<32x32xf32>, vector<2x32xf32> -> vector<2x32xf32>
    %84 = arith.addf %80, %83 : vector<2x32xf32>
    %85 = vector.extract_strided_slice %67 {offsets = [8, 0], sizes = [2, 32], strides = [1, 1]} : vector<16x32xf32> to vector<2x32xf32>
    %c456 = arith.constant 456 : index
    %c0_47 = arith.constant 0 : index
    %86 = vector.load %arg1[%c456, %c0_47] : memref<592x32xf32, #tpu.memory_space<vmem>>, vector<32x32xf32>
    %cst_48 = arith.constant dense<0.000000e+00> : vector<2x32xf32>
    %87 = tpu.matmul %85, %86, %cst_48 {dimension_numbers = #tpu.dot_dimension_numbers<[1], [0], [0], [1], [0, 0, 1, 1], [], []>} : vector<2x32xf32>, vector<32x32xf32>, vector<2x32xf32> -> vector<2x32xf32>
    %88 = arith.addf %84, %87 : vector<2x32xf32>
    %89 = vector.extract_strided_slice %67 {offsets = [10, 0], sizes = [2, 32], strides = [1, 1]} : vector<16x32xf32> to vector<2x32xf32>
    %c488 = arith.constant 488 : index
    %c0_49 = arith.constant 0 : index
    %90 = vector.load %arg1[%c488, %c0_49] : memref<592x32xf32, #tpu.memory_space<vmem>>, vector<32x32xf32>
    %cst_50 = arith.constant dense<0.000000e+00> : vector<2x32xf32>
    %91 = tpu.matmul %89, %90, %cst_50 {dimension_numbers = #tpu.dot_dimension_numbers<[1], [0], [0], [1], [0, 0, 1, 1], [], []>} : vector<2x32xf32>, vector<32x32xf32>, vector<2x32xf32> -> vector<2x32xf32>
    %92 = arith.addf %88, %91 : vector<2x32xf32>
    %93 = vector.extract_strided_slice %67 {offsets = [12, 0], sizes = [2, 32], strides = [1, 1]} : vector<16x32xf32> to vector<2x32xf32>
    %c520 = arith.constant 520 : index
    %c0_51 = arith.constant 0 : index
    %94 = vector.load %arg1[%c520, %c0_51] : memref<592x32xf32, #tpu.memory_space<vmem>>, vector<32x32xf32>
    %cst_52 = arith.constant dense<0.000000e+00> : vector<2x32xf32>
    %95 = tpu.matmul %93, %94, %cst_52 {dimension_numbers = #tpu.dot_dimension_numbers<[1], [0], [0], [1], [0, 0, 1, 1], [], []>} : vector<2x32xf32>, vector<32x32xf32>, vector<2x32xf32> -> vector<2x32xf32>
    %96 = arith.addf %92, %95 : vector<2x32xf32>
    %97 = vector.extract_strided_slice %67 {offsets = [14, 0], sizes = [2, 32], strides = [1, 1]} : vector<16x32xf32> to vector<2x32xf32>
    %c552 = arith.constant 552 : index
    %c0_53 = arith.constant 0 : index
    %98 = vector.load %arg1[%c552, %c0_53] : memref<592x32xf32, #tpu.memory_space<vmem>>, vector<32x32xf32>
    %cst_54 = arith.constant dense<0.000000e+00> : vector<2x32xf32>
    %99 = tpu.matmul %97, %98, %cst_54 {dimension_numbers = #tpu.dot_dimension_numbers<[1], [0], [0], [1], [0, 0, 1, 1], [], []>} : vector<2x32xf32>, vector<32x32xf32>, vector<2x32xf32> -> vector<2x32xf32>
    %100 = arith.addf %96, %99 : vector<2x32xf32>
    %101 = vector.extract_strided_slice %2 {offsets = [3, 0], sizes = [1, 32], strides = [1, 1]} : vector<8x32xf32> to vector<1x32xf32>
    %102 = vector.broadcast %101 : vector<1x32xf32> to vector<2x32xf32>
    %103 = arith.addf %100, %102 : vector<2x32xf32>
    %cst_55 = arith.constant 0.000000e+00 : f32
    %104 = vector.broadcast %cst_55 : f32 to vector<2x32xf32>
    %105 = arith.maximumf %103, %104 : vector<2x32xf32>
    %106 = vector.extract_strided_slice %2 {offsets = [4, 0], sizes = [1, 32], strides = [1, 1]} : vector<8x32xf32> to vector<1x32xf32>
    %107 = vector.extract_strided_slice %2 {offsets = [5, 0], sizes = [1, 1], strides = [1, 1]} : vector<8x32xf32> to vector<1x1xf32>
    %108 = vector.broadcast %106 : vector<1x32xf32> to vector<2x32xf32>
    %109 = arith.mulf %105, %108 : vector<2x32xf32>
    %cst_56 = arith.constant dense<0.000000e+00> : vector<2xf32>
    %110 = vector.multi_reduction <add>, %109, %cst_56 [1] : vector<2x32xf32> to vector<2xf32>
    %111 = vector.shape_cast %110 : vector<2xf32> to vector<2x1xf32>
    %112 = vector.broadcast %107 : vector<1x1xf32> to vector<2x1xf32>
    %113 = arith.addf %111, %112 : vector<2x1xf32>
    %c0_57 = arith.constant 0 : index
    %c0_58 = arith.constant 0 : index
    %114 = vector.load %arg2[%c0_57, %c0_58] : memref<2x1xf32, #tpu.memory_space<vmem>>, vector<2x1xf32>
    tpu.vector_store %arg2[%c0_57, %c0_58], %113 {strides = array<i32>} : memref<2x1xf32, #tpu.memory_space<vmem>>, vector<2x1xf32>,
    return
  }
}

</mosaic_0001>

<bundles_post_ra>
// kernel: ebm_forward.1
= control target key start
LH: loop header
LB: loop body
LE: loop exit
PB: predicated region body
PF: predicated region fallthrough
CT: control target
= control target key end

     0   :  { %vm26_vm0 = vcmask 1044480   ;;  %vm19_vm1 = vcmask 171008   ;;  %vm85_vm2 = vcmask 261120   ;;  %v53_v20 = vlaneseq  ;;  %s1008_s1 = inlined_call_operand.vmem [shape: f32[592,32], index: 1, kind: input, shape index: {}]   ;;  %s1009_s0 = inlined_call_operand.vmem [shape: f32[16,21], index: 0, kind: input, shape index: {}]   ;;  %s1010_s2 = inlined_call_operand.vmem [shape: f32[2,1], index: 2, kind: output, shape index: {}]  }
   0x1   :  { %v13_v0 = vld [vmem:[%s1008_s1 + $0x10] sm:$0x1f]  ;;  %v12_v1 = vld [vmem:[%s1008_s1 + $0x8] sm:$0xff]  ;;  %v67_v2 = vld [vmem:[%s1008_s1 + $0x60] sm:$0xff]  ;;  %vm643_vm6 = vcmask 254976   ;;  %vm649_vm7 = vcmask 1024  }
   0x2   :  { %655 = vmatpush.msk.msra.mxu0 %vm26_vm0, %v13_v0  ;;  %v11_v3 = vld [vmem:[%s1008_s1] sm:$0xff]  ;;  %133 = vmatpush.msra.mxu2 %v67_v2  ;;  %v66_v4 = vld [vmem:[%s1008_s1 + $0x58] sm:$0xff]  ;;  %v18_v6 = vld [vmem:[%s1009_s0 + $0x8] sm:$0xff]  ;;  %v757_v22 = vshrl.u32 %v53_v20, 7 }
   0x3   :  { %v17_v5 = vld [vmem:[%s1009_s0] sm:$0xff]  ;;  %v65_v7 = vld [vmem:[%s1008_s1 + $0x50] sm:$0xff]  ;;  %v64_v8 = vld [vmem:[%s1008_s1 + $0x48] sm:$0xff] }
   0x4   :  { %44 = vmatpush.msra.mxu0 %v12_v1  ;;  %134 = vmatpush.msra.mxu2 %v66_v4  ;;  %v71_v9 = vld [vmem:[%s1008_s1 + $0x80] sm:$0xff]  ;;  %v70_v11 = vld [vmem:[%s1008_s1 + $0x78] sm:$0xff]  ;;  %v69_v13 = vld [vmem:[%s1008_s1 + $0x70] sm:$0xff]  ;;  %vm56_vm3 = vcmp.lt.s32.totalorder %v757_v22, 2  ;;  %vm80_vm4 = vcmp.lt.s32.totalorder %v757_v22, 6  ;;  %v770_v32 = vadd.s32 8, %v757_v22 }
   0x5   :  { %162 = vmatpush.msra.mxu3 %v71_v9  ;;  %v63_v10 = vld [vmem:[%s1008_s1 + $0x40] sm:$0xff]  ;;  %v62_v12 = vld [vmem:[%s1008_s1 + $0x38] sm:$0xff]  ;;  %v61_v14 = vld [vmem:[%s1008_s1 + $0x30] sm:$0xff] }
   0x6   :  { %45 = vmatpush.msra.mxu0 %v11_v3  ;;  %135 = vmatpush.msra.mxu2 %v65_v7  ;;  %v68_v15 = vld [vmem:[%s1008_s1 + $0x68] sm:$0xff]  ;;  %v14_v17 = vld [vmem:[%s1008_s1 + $0x18] sm:$0xff]  ;;  %v15_v21 = vld [vmem:[%s1008_s1 + $0x20] sm:$0xff]  ;;  %vm59_vm5 = vcmp.ge.s32.totalorder %v770_v32, 14 }
   0x7   :  { %656 = vmatmul.msk.f32.vlgmr.msra.gmra.mxu0 %vm19_vm1, %v17_v5  ;;  %104 = vmatpush.msra.mxu1 %v63_v10  ;;  %v60_v16 = vld [vmem:[%s1008_s1 + $0x28] sm:$0xff]  ;;  %v187_v36 = vld [vmem:[%s1008_s1 + $0xc0] sm:$0xff]  ;;  %v186_v37 = vld [vmem:[%s1008_s1 + $0xb8] sm:$0xff] }
   0x8   :  { %136 = vmatpush.msra.mxu2 %v64_v8  ;;  %163 = vmatpush.msra.mxu3 %v70_v11  ;;  %v185_v38 = vld [vmem:[%s1008_s1 + $0xb0] sm:$0xff]  ;;  %v184_v39 = vld [vmem:[%s1008_s1 + $0xa8] sm:$0xff]  ;;  %v191_v40 = vld [vmem:[%s1008_s1 + $0xe0] sm:$0xff] }
   0x9   :  { %105 = vmatpush.msra.mxu1 %v62_v12  ;;  %v183_v41 = vld [vmem:[%s1008_s1 + $0xa0] sm:$0xff]  ;;  %v190_v42 = vld [vmem:[%s1008_s1 + $0xd8] sm:$0xff]  ;;  %v189_v44 = vld [vmem:[%s1008_s1 + $0xd0] sm:$0xff] }
   0xa   :  { %164 = vmatpush.msra.mxu3 %v69_v13  ;;  %280 = vmatpush.msrb.mxu2 %v191_v40  ;;  %v182_v43 = vld [vmem:[%s1008_s1 + $0x98] sm:$0xff]  ;;  %v181_v45 = vld [vmem:[%s1008_s1 + $0x90] sm:$0xff]  ;;  %v188_v46 = vld [vmem:[%s1008_s1 + $0xc8] sm:$0xff] }
   0xb   :  { %106 = vmatpush.msra.mxu1 %v61_v14  ;;  %222 = vmatpush.msrb.mxu0 %v183_v41  ;;  %v180_v47 = vld [vmem:[%s1008_s1 + $0x88] sm:$0xff]  ;;  %v305_v10 = vld [vmem:[%s1008_s1 + $0x120] sm:$0xff]  ;;  %v304_v11 = vld [vmem:[%s1008_s1 + $0x118] sm:$0xff] }
   0xc   :  { %165 = vmatpush.msra.mxu3 %v68_v15  ;;  %281 = vmatpush.msrb.mxu2 %v190_v42  ;;  %v821_v50 = vld [vmem:[%s1008_s1 + $0x248] sm:$0xff]  ;;  %v303_v12 = vld [vmem:[%s1008_s1 + $0x110] sm:$0xff]  ;;  %v301_v14 = vld [vmem:[%s1008_s1 + $0x100] sm:$0xff] }
   0xd   :  { %107 = vmatpush.msra.mxu1 %v60_v16  ;;  %223 = vmatpush.msrb.mxu0 %v182_v43  ;;  %v175_v52 = vperm.slane %v821_v50, 0  ;;  %v302_v13 = vld [vmem:[%s1008_s1 + $0x108] sm:$0xff]  ;;  %v300_v15 = vld [vmem:[%s1008_s1 + $0xf8] sm:$0xff]  ;;  %v309_v16 = vld [vmem:[%s1008_s1 + $0x140] sm:$0xff] }
   0xe   :  { %282 = vmatpush.msrb.mxu2 %v189_v44  ;;  %340 = vmatpush.msrb.mxu3 %v301_v14  ;;  %v298_v20 = vld [vmem:[%s1008_s1 + $0xe8] sm:$0xff]  ;;  %v422_v32 = vld [vmem:[%s1008_s1 + $0x178] sm:$0xff] }
   0xf   :  { %657 = vmatmul.msk.f32.gmra.mxu0 %vm19_vm1, %v18_v6  ;;  %251 = vmatpush.msrb.mxu1 %v187_v36  ;;  %v418_v22 = vld [vmem:[%s1008_s1 + $0x158] sm:$0xff] }
  0x10   :  { %224 = vmatpush.msrb.mxu0 %v181_v45  ;;  %283 = vmatpush.msrb.mxu2 %v188_v46 }
  0x11   :  { %252 = vmatpush.msrb.mxu1 %v186_v37  ;;  %341 = vmatpush.msrb.mxu3 %v300_v15 }
  0x12   :  { %225 = vmatpush.msrb.mxu0 %v180_v47 }
  0x13   :  { %253 = vmatpush.msrb.mxu1 %v185_v38 }
  0x14   :  { %369 = vmatpush.msra.mxu0 %v305_v10 }
  0x15   :  { %254 = vmatpush.msrb.mxu1 %v184_v39 }
  0x16   :  { %370 = vmatpush.msra.mxu0 %v304_v11 }
  0x18   :  { %371 = vmatpush.msra.mxu0 %v303_v12  ;;  %v411_v12 = vperm.slane %v821_v50, 2 }
  0x1a   :  { %372 = vmatpush.msra.mxu0 %v302_v13 }
  0x84   :  { %v47_v18 = vpop.f32.mrf.mxu0 }
  0x85   :  { %v48_v19 = vadd.f32 %v47_v18, %v14_v17  ;;  %v308_v17 = vld [vmem:[%s1008_s1 + $0x138] sm:$0xff]  ;;  %v307_v18 = vld [vmem:[%s1008_s1 + $0x130] sm:$0xff] }
  0x87   :  { %660 = vmatmul.msk.f32.vlgmr.msra.gmra.mxu2 %vm85_vm2, %v48_v19  ;;  %v72_v25 = vrot.slane %v48_v19, 6  ;;  %v78_v26 = vrot.slane %v48_v19, 2  ;;  %v299_v19 = vld [vmem:[%s1008_s1 + $0xf0] sm:$0xff] }
  0x88   :  { %342 = vmatpush.msrb.mxu3 %v299_v19 }
  0x8a   :  { %343 = vmatpush.msrb.mxu3 %v298_v20 }
  0x8c   :  { %v50_v23 = vpop.f32.mrf.mxu0 }
  0x8d   :  { %v51_v24 = vadd.f32 %v50_v23, %v15_v21  ;;  %v306_v21 = vld [vmem:[%s1008_s1 + $0x128] sm:$0xff] }
  0x8f   :  { %v73_v27 = vrot.slane %v51_v24, 6  ;;  %v79_v28 = vrot.slane %v51_v24, 2  ;;  %661 = vmatmul.msk.f32.gmra.mxu2 %vm85_vm2, %v51_v24 }
  0x91   :  { %v81_v29 = vsel %vm80_vm4, %v78_v26, %v79_v28  ;;  %v75_v30 = vsel %vm56_vm3, %v73_v27, %v72_v25  ;;  %v82_v33 = vsel %vm80_vm4, %v79_v28, %v78_v26  ;;  %v74_v35 = vsel %vm56_vm3, %v72_v25, %v73_v27 }
  0x92   :  { %662 = vmatmul.msk.f32.vlgmr.msra.gmra.mxu3 %vm85_vm2, %v81_v29  ;;  %v76_v31 = vsel %vm56_vm3, 0.0, %v75_v30  ;;  %v84_v34 = vsel %vm59_vm5, 0.0, %v82_v33  ;;  %v293_v26 = vperm.slane %v821_v50, 1 }
  0x93   :  { %658 = vmatmul.msk.f32.vlgmr.msra.gmra.mxu1 %vm85_vm2, %v76_v31 }
  0x94   :  { %398 = vmatpush.msra.mxu1 %v309_v16  ;;  %v613_v16 = vld [vmem:[%s1008_s1 + $0x240] sm:$0xff] }
  0x96   :  { %399 = vmatpush.msra.mxu1 %v308_v17 }
  0x98   :  { %400 = vmatpush.msra.mxu1 %v307_v18 }
  0x9a   :  { %663 = vmatmul.msk.f32.gmra.mxu3 %vm85_vm2, %v84_v34  ;;  %401 = vmatpush.msra.mxu1 %v306_v21  ;;  %v585_v21 = vld [vmem:[%s1008_s1 + $0x220] sm:$0xff] }
  0x9b   :  { %659 = vmatmul.msk.f32.gmra.mxu1 %vm85_vm2, %v74_v35 }
 0x10a   :  { %v138_v49 = vpop.f32.mrf.mxu2 }
 0x110   :  { %v109_v48 = vpop.f32.mrf.mxu1 }
 0x111   :  { %v139_v51 = vadd.f32 %v138_v49, %v109_v48  ;;  %v423_v49 = vld [vmem:[%s1008_s1 + $0x180] sm:$0xff] }
 0x112   :  { %v141_v58 = vpop.f32.mrf.mxu2  ;;  %440 = vmatpush.msra.mxu2 %v423_v49 }
 0x114   :  { %441 = vmatpush.msra.mxu2 %v422_v32 }
 0x115   :  { %v167_v53 = vpop.f32.mrf.mxu3 }
 0x116   :  { %v173_v54 = vadd.f32 %v167_v53, %v139_v51  ;;  %v419_v51 = vld [vmem:[%s1008_s1 + $0x160] sm:$0xff]  ;;  %v421_v53 = vld [vmem:[%s1008_s1 + $0x170] sm:$0xff] }
 0x117   :  { %462 = vmatpush.msra.mxu3 %v419_v51  ;;  %442 = vmatpush.msra.mxu2 %v421_v53 }
 0x118   :  { %v176_v55 = vadd.f32 %v175_v52, %v173_v54  ;;  %v112_v56 = vpop.f32.mrf.mxu1  ;;  %v420_v54 = vld [vmem:[%s1008_s1 + $0x168] sm:$0xff] }
 0x119   :  { %v142_v59 = vadd.f32 %v141_v58, %v112_v56  ;;  %463 = vmatpush.msra.mxu3 %v418_v22  ;;  %v501_v56 = vld [vmem:[%s1008_s1 + $0x1c0] sm:$0xff]  ;;  %443 = vmatpush.msra.mxu2 %v420_v54  ;;  %v638_v22 = vperm.slane %v821_v50, 3 }
 0x11a   :  { %v178_v57 = vmax.f32 %v176_v55, 0.0  ;;  %v416_v55 = vld [vmem:[%s1008_s1 + $0x148] sm:$0xff]  ;;  %v473_v58 = vld [vmem:[%s1008_s1 + $0x1a0] sm:$0xff] }
 0x11c   :  { %666 = vmatmul.msk.f32.vlgmr.msrb.gmra.mxu1 %vm85_vm2, %v178_v57  ;;  %v192_v0 = vrot.slane %v178_v57, 6  ;;  %v198_v1 = vrot.slane %v178_v57, 2  ;;  %v529_v57 = vld [vmem:[%s1008_s1 + $0x1e0] sm:$0xff] }
 0x11d   :  { %v170_v60 = vpop.f32.mrf.mxu3 }
 0x11e   :  { %v174_v61 = vadd.f32 %v170_v60, %v142_v59  ;;  %v500_v59 = vld [vmem:[%s1008_s1 + $0x1b8] sm:$0xff] }
 0x11f   :  { %v528_v60 = vld [vmem:[%s1008_s1 + $0x1d8] sm:$0xff] }
 0x120   :  { %v177_v62 = vadd.f32 %v175_v52, %v174_v61  ;;  %v417_v52 = vld [vmem:[%s1008_s1 + $0x150] sm:$0xff]  ;;  %v557_v61 = vld [vmem:[%s1008_s1 + $0x200] sm:$0xff] }
 0x121   :  { %464 = vmatpush.msra.mxu3 %v417_v52  ;;  %573 = vmatpush.msrb.mxu1 %v557_v61 }
 0x122   :  { %v179_v63 = vmax.f32 %v177_v62, 0.0  ;;  %v472_v62 = vld [vmem:[%s1008_s1 + $0x198] sm:$0xff] }
 0x123   :  { %465 = vmatpush.msra.mxu3 %v416_v55  ;;  %v641_v55 = vperm.slane %v821_v50, 4 }
 0x124   :  { %v193_v2 = vrot.slane %v179_v63, 6  ;;  %v199_v3 = vrot.slane %v179_v63, 2  ;;  %667 = vmatmul.msk.f32.gmra.mxu1 %vm85_vm2, %v179_v63  ;;  %v499_v63 = vld [vmem:[%s1008_s1 + $0x1b0] sm:$0xff] }
 0x126   :  { %v200_v4 = vsel %vm80_vm4, %v198_v1, %v199_v3  ;;  %v195_v5 = vsel %vm56_vm3, %v193_v2, %v192_v0  ;;  %v201_v7 = vsel %vm80_vm4, %v199_v3, %v198_v1  ;;  %v194_v9 = vsel %vm56_vm3, %v192_v0, %v193_v2  ;;  %v527_v0 = vld [vmem:[%s1008_s1 + $0x1d0] sm:$0xff]  ;;  %v556_v1 = vld [vmem:[%s1008_s1 + $0x1f8] sm:$0xff]  ;;  %v498_v3 = vld [vmem:[%s1008_s1 + $0x1a8] sm:$0xff] }
 0x127   :  { %668 = vmatmul.msk.f32.vlgmr.msrb.gmra.mxu2 %vm85_vm2, %v200_v4  ;;  %v196_v6 = vsel %vm56_vm3, 0.0, %v195_v5  ;;  %v203_v8 = vsel %vm59_vm5, 0.0, %v201_v7  ;;  %574 = vmatpush.msrb.mxu1 %v556_v1  ;;  %v471_v2 = vld [vmem:[%s1008_s1 + $0x190] sm:$0xff]  ;;  %v526_v4 = vld [vmem:[%s1008_s1 + $0x1c8] sm:$0xff] }
 0x128   :  { %664 = vmatmul.msk.f32.vlgmr.msrb.gmra.mxu0 %vm85_vm2, %v196_v6  ;;  %489 = vmatpush.msrb.mxu2 %v473_v58  ;;  %v555_v5 = vld [vmem:[%s1008_s1 + $0x1f0] sm:$0xff]  ;;  %v470_v6 = vld [vmem:[%s1008_s1 + $0x188] sm:$0xff] }
 0x129   :  { %545 = vmatpush.msrb.mxu0 %v529_v57  ;;  %575 = vmatpush.msrb.mxu1 %v555_v5  ;;  %v554_v7 = vld [vmem:[%s1008_s1 + $0x1e8] sm:$0xff] }
 0x12a   :  { %490 = vmatpush.msrb.mxu2 %v472_v62 }
 0x12b   :  { %546 = vmatpush.msrb.mxu0 %v528_v60  ;;  %576 = vmatpush.msrb.mxu1 %v554_v7 }
 0x12c   :  { %491 = vmatpush.msrb.mxu2 %v471_v2 }
 0x12d   :  { %547 = vmatpush.msrb.mxu0 %v527_v0 }
 0x12e   :  { %492 = vmatpush.msrb.mxu2 %v470_v6 }
 0x12f   :  { %669 = vmatmul.msk.f32.gmra.mxu2 %vm85_vm2, %v203_v8  ;;  %548 = vmatpush.msrb.mxu0 %v526_v4 }
 0x130   :  { %665 = vmatmul.msk.f32.gmra.mxu0 %vm85_vm2, %v194_v9 }
 0x199   :  { %v256_v24 = vpop.f32.mrf.mxu1 }
 0x1a1   :  { %v259_v33 = vpop.f32.mrf.mxu1 }
 0x1a5   :  { %v227_v23 = vpop.f32.mrf.mxu0 }
 0x1a6   :  { %v257_v25 = vadd.f32 %v256_v24, %v227_v23  ;;  %v612_v23 = vld [vmem:[%s1008_s1 + $0x238] sm:$0xff] }
 0x1aa   :  { %v285_v27 = vpop.f32.mrf.mxu2 }
 0x1ab   :  { %v291_v28 = vadd.f32 %v285_v27, %v257_v25  ;;  %v611_v27 = vld [vmem:[%s1008_s1 + $0x230] sm:$0xff] }
 0x1ad   :  { %v294_v29 = vadd.f32 %v293_v26, %v291_v28  ;;  %v230_v30 = vpop.f32.mrf.mxu0 }
 0x1ae   :  { %v260_v34 = vadd.f32 %v259_v33, %v230_v30  ;;  %v610_v30 = vld [vmem:[%s1008_s1 + $0x228] sm:$0xff] }
 0x1af   :  { %v296_v31 = vmax.f32 %v294_v29, 0.0  ;;  %v583_v29 = vld [vmem:[%s1008_s1 + $0x210] sm:$0xff] }
 0x1b1   :  { %672 = vmatmul.msk.f32.vlgmr.msra.gmra.mxu0 %vm85_vm2, %v296_v31  ;;  %v310_v39 = vrot.slane %v296_v31, 6  ;;  %v316_v40 = vrot.slane %v296_v31, 2 }
 0x1b2   :  { %v288_v35 = vpop.f32.mrf.mxu2 }
 0x1b3   :  { %v292_v36 = vadd.f32 %v288_v35, %v260_v34  ;;  %v582_v34 = vld [vmem:[%s1008_s1 + $0x208] sm:$0xff] }
 0x1b5   :  { %v295_v37 = vadd.f32 %v293_v26, %v292_v36  ;;  %v584_v26 = vld [vmem:[%s1008_s1 + $0x218] sm:$0xff] }
 0x1b7   :  { %v297_v38 = vmax.f32 %v295_v37, 0.0 }
 0x1b9   :  { %v311_v41 = vrot.slane %v297_v38, 6  ;;  %v317_v42 = vrot.slane %v297_v38, 2  ;;  %673 = vmatmul.msk.f32.gmra.mxu0 %vm85_vm2, %v297_v38 }
 0x1bb   :  { %v318_v43 = vsel %vm80_vm4, %v316_v40, %v317_v42  ;;  %v313_v44 = vsel %vm56_vm3, %v311_v41, %v310_v39  ;;  %v319_v46 = vsel %vm80_vm4, %v317_v42, %v316_v40  ;;  %v312_v48 = vsel %vm56_vm3, %v310_v39, %v311_v41 }
 0x1bc   :  { %674 = vmatmul.msk.f32.vlgmr.msra.gmra.mxu1 %vm85_vm2, %v318_v43  ;;  %v314_v45 = vsel %vm56_vm3, 0.0, %v313_v44  ;;  %v321_v47 = vsel %vm59_vm5, 0.0, %v319_v46 }
 0x1bd   :  { %670 = vmatmul.msk.f32.vlgmr.msrb.gmra.mxu3 %vm85_vm2, %v314_v45 }
 0x1be   :  { %517 = vmatpush.msrb.mxu3 %v501_v56 }
 0x1c0   :  { %518 = vmatpush.msrb.mxu3 %v500_v59  ;;  %v647_v59 = vperm.slane %v821_v50, 5 }
 0x1c2   :  { %519 = vmatpush.msrb.mxu3 %v499_v63 }
 0x1c4   :  { %675 = vmatmul.msk.f32.gmra.mxu1 %vm85_vm2, %v321_v47  ;;  %520 = vmatpush.msrb.mxu3 %v498_v3 }
 0x1c5   :  { %671 = vmatmul.msk.f32.gmra.mxu3 %vm85_vm2, %v312_v48 }
 0x22e   :  { %v374_v8 = vpop.f32.mrf.mxu0 }
 0x236   :  { %v377_v17 = vpop.f32.mrf.mxu0 }
 0x239   :  { %v403_v9 = vpop.f32.mrf.mxu1 }
 0x240   :  { %v345_v10 = vpop.f32.mrf.mxu3 }
 0x241   :  { %v375_v11 = vadd.f32 %v374_v8, %v345_v10  ;;  %v406_v24 = vpop.f32.mrf.mxu1 }
 0x243   :  { %v409_v13 = vadd.f32 %v403_v9, %v375_v11 }
 0x245   :  { %v412_v14 = vadd.f32 %v411_v12, %v409_v13 }
 0x247   :  { %v414_v15 = vmax.f32 %v412_v14, 0.0 }
 0x248   :  { %v348_v18 = vpop.f32.mrf.mxu3 }
 0x249   :  { %v378_v19 = vadd.f32 %v377_v17, %v348_v18  ;;  %677 = vmatmul.msk.f32.vlgmr.msra.gmra.mxu3 %vm85_vm2, %v414_v15  ;;  %v425_v20 = vrot.slane %v414_v15, 2  ;;  %v502_v33 = vrot.slane %v414_v15, 6  ;;  %v474_v35 = vrot.slane %v414_v15, 4 }
 0x24a   :  { %629 = vmatpush.msra.mxu3 %v613_v16 }
 0x24b   :  { %v410_v25 = vadd.f32 %v406_v24, %v378_v19  ;;  %676 = vmatmul.msk.f32.vlgmr.msra.gmra.mxu2 %vm85_vm2, %v425_v20 }
 0x24c   :  { %601 = vmatpush.msra.mxu2 %v585_v21  ;;  %630 = vmatpush.msra.mxu3 %v612_v23 }
 0x24d   :  { %v413_v28 = vadd.f32 %v411_v12, %v410_v25 }
 0x24e   :  { %602 = vmatpush.msra.mxu2 %v584_v26  ;;  %631 = vmatpush.msra.mxu3 %v611_v27 }
 0x24f   :  { %v415_v31 = vmax.f32 %v413_v28, 0.0 }
 0x250   :  { %603 = vmatpush.msra.mxu2 %v583_v29  ;;  %632 = vmatpush.msra.mxu3 %v610_v30 }
 0x251   :  { %679 = vmatmul.msk.f32.vlgmr.msrb.gmra.mxu3 %vm85_vm2, %v502_v33  ;;  %680 = vmatmul.msk.f32.vlgmr.msrb.gmra.mxu0 %vm85_vm2, %v415_v31  ;;  %v558_v36 = vrot.slane %v415_v31, 2  ;;  %v614_v37 = vrot.slane %v415_v31, 6  ;;  %v586_v38 = vrot.slane %v415_v31, 4 }
 0x252   :  { %604 = vmatpush.msra.mxu2 %v582_v34 }
 0x253   :  { %678 = vmatmul.msk.f32.vlgmr.msrb.gmra.mxu2 %vm85_vm2, %v474_v35  ;;  %681 = vmatmul.msk.f32.vlgmr.msrb.gmra.mxu1 %vm85_vm2, %v558_v36 }
 0x259   :  { %683 = vmatmul.msk.f32.vlgmr.msra.gmra.mxu3 %vm85_vm2, %v614_v37 }
 0x25b   :  { %682 = vmatmul.msk.f32.vlgmr.msra.gmra.mxu2 %vm85_vm2, %v586_v38 }
 0x2cc   :  { %v467_v39 = vpop.f32.mrf.mxu3 }
 0x2ce   :  { %v445_v40 = vpop.f32.mrf.mxu2  ;;  %v550_v46 = vpop.f32.mrf.mxu0 }
 0x2cf   :  { %v468_v41 = vadd.f32 %v467_v39, %v445_v40 }
 0x2d0   :  { %v578_v48 = vpop.f32.mrf.mxu1 }
 0x2d4   :  { %v522_v42 = vpop.f32.mrf.mxu3 }
 0x2d6   :  { %v494_v43 = vpop.f32.mrf.mxu2 }
 0x2d7   :  { %v497_v44 = vadd.f32 %v494_v43, %v468_v41 }
 0x2d9   :  { %v525_v45 = vadd.f32 %v522_v42, %v497_v44 }
 0x2db   :  { %v553_v47 = vadd.f32 %v550_v46, %v525_v45 }
 0x2dc   :  { %v634_v52 = vpop.f32.mrf.mxu3 }
 0x2dd   :  { %v581_v49 = vadd.f32 %v578_v48, %v553_v47 }
 0x2de   :  { %v606_v51 = vpop.f32.mrf.mxu2 }
 0x2df   :  { %v609_v32 = vadd.f32 %v606_v51, %v581_v49 }
 0x2e1   :  { %v637_v53 = vadd.f32 %v634_v52, %v609_v32 }
 0x2e3   :  { %v639_v54 = vadd.f32 %v638_v22, %v637_v53 }
 0x2e5   :  { %v640_v56 = vmax.f32 %v639_v54, 0.0 }
 0x2e7   :  { %v642_v57 = vmul.f32 %v641_v55, %v640_v56 }
 0x2e9   :  { %v644_v58 = vsel %vm643_vm6, %v642_v57, 0.0 }
 0x2ea   :  { %645 = vadd.xlane.f32.xlu0 %v644_v58 }
 0x35d   :  { %v646_v60 = vpop.xlane.xlu0 %645 }
 0x35e   :  { %v648_v61 = vadd.f32 %v647_v59, %v646_v60 }
 0x360   :  { %650 = vst.msk [vmem:[%s1010_s2] sm:$0x3] %vm649_vm7, %v648_v61 }

</bundles_post_ra>
